<compile_context>
chip_gen: v7x
topology: tpu7x:2x2x1
jax: 0.10.0
libtpu: 0.0.40
codegen_flags: <defaults>
</compile_context>

<pallas_src>
import random
import numpy as np

import jax
import jax.numpy as jnp
from jax import lax
from jax.experimental import pallas as pl
from jax.experimental.pallas import tpu as pltpu


def _rvs_kernel(vals_ref, tem_ref, out_ref):
    """One row tile: out[0, r] = vals[tem[0, r], r] for every lane r."""
    vals = vals_ref[...]                                   # (P, T) int16/int32
    tem = tem_ref[...]                                     # (1, T) int32
    pt = lax.broadcasted_iota(jnp.int32, vals.shape, 0)    # point slot along sublanes
    onehot = pt == tem                                     # (P, T); tem bcast over sublanes
    masked = jnp.where(onehot, vals, jnp.zeros((), vals.dtype))
    # Exactly one nonzero per column -> sum == selected value.  Keep lane data
    # in the native (int16) dtype; accumulate the sublane reduce in int32.
    out_ref[...] = jnp.sum(masked, axis=0, keepdims=True, dtype=jnp.int32)


def _choose_tile_rows(rows, max_pts_p, itemsize, block_budget_bytes=8 << 20):
    """Largest 128-multiple row tile whose vals block fits the budget, clamped
    so the grid keeps >= 2 steps when possible (v7x megacore)."""
    t = block_budget_bytes // (max_pts_p * itemsize)
    t = max(128, (t // 128) * 128)
    half = max(128, ((rows + 255) // 256) * 128)   # ~ceil(rows/2), 128-aligned
    return min(t, half)


def _sample_points_pallas(vals, tem, tile_rows):
    """vals: (max_pts_p, rows_pad) transposed point table; tem: (1, rows_pad)."""
    max_pts_p, rows_pad = vals.shape
    assert tile_rows % 128 == 0 and rows_pad % tile_rows == 0
    n_tiles = rows_pad // tile_rows

    bytes_accessed = (
        vals.size * vals.dtype.itemsize     # padded point table (dominant stream)
        + tem.size * 4                      # per-row precomputed draw
        + rows_pad * 4                      # output
    )
    cost = pl.CostEstimate(flops=3 * vals.size, transcendentals=0,
                           bytes_accessed=bytes_accessed)

    return pl.pallas_call(
        _rvs_kernel,
        out_shape=jax.ShapeDtypeStruct((1, rows_pad), jnp.int32),
        grid=(n_tiles,),
        in_specs=[
            pl.BlockSpec((max_pts_p, tile_rows), lambda i: (0, i)),   # vals (transposed)
            pl.BlockSpec((1, tile_rows), lambda i: (0, i)),           # tem (lane-dense)
        ],
        out_specs=pl.BlockSpec((1, tile_rows), lambda i: (0, i)),     # lane-dense output
        compiler_params=pltpu.CompilerParams(
            dimension_semantics=("parallel",),
            vmem_limit_bytes=32 * 1024 * 1024),
        cost_estimate=cost,
    )(vals, tem)


def rvs_forward(pos, index_voxels, npoints, seed=0):
    """Pallas-backed equivalent of RVS.forward(pos, index_voxels)."""
    B = len(index_voxels)
    N = int(pos.shape[1])
    rng = random.Random(seed)

    use_i16 = (N - 1) <= np.iinfo(np.int16).max
    val_dtype = np.int16 if use_i16 else np.int32
    itemsize = 2 if use_i16 else 4
    sub_align = 16 if use_i16 else 8                   # native sublane count

    # Per-voxel point-count bound (no 128-lane padding; sublane-align only).
    max_pts = 1
    for d in index_voxels:
        for v in d.values():
            max_pts = max(max_pts, len(v))
    max_pts_p = max(sub_align, ((max_pts + sub_align - 1) // sub_align) * sub_align)

    rows = B * npoints
    tile_rows = _choose_tile_rows(rows, max_pts_p, itemsize)
    rows_pad = ((rows + tile_rows - 1) // tile_rows) * tile_rows

    # Transposed padded table: vals[p, r] = p-th point index of row r's voxel.
    vals = np.zeros((max_pts_p, rows_pad), dtype=val_dtype)
    lens = np.ones((1, rows_pad), dtype=np.int32)      # padded rows keep len >= 1
    centroids_index = []
    num_selected = []

    # Host glue: voxel-key selection (same host-side randomness as the original).
    for b in range(B):
        vox = index_voxels[b]
        keys = list(vox.keys())
        if npoints <= len(keys):
            selected = rng.sample(keys, npoints)
        else:
            selected = keys
        num_selected.append(len(selected))
        idxs = []
        for i, k in enumerate(selected):
            v = np.asarray(vox[k], dtype=val_dtype)
            r = b * npoints + i
            vals[: len(v), r] = v
            lens[0, r] = len(v)
            idxs.append([b, int(k[0]), int(k[1]), int(k[2])])
        centroids_index.append(idxs)

    # Per-row uniform draw, resolved OUTSIDE the kernel:
    #   tem = min(floor(u * len), len - 1)
    # (float32 floor is exact while len < 2^24; clamp guards the u ~= 1.0 edge.
    #  Random stream is jax.random, distributionally equivalent to randint.)
    lens_j = jnp.asarray(lens)
    u = jax.random.uniform(jax.random.PRNGKey(seed), (1, rows_pad), dtype=jnp.float32)
    tem = jnp.minimum((u * lens_j.astype(jnp.float32)).astype(jnp.int32), lens_j - 1)

    out = _sample_points_pallas(jnp.asarray(vals), tem, tile_rows)
    cent = np.asarray(out)[0, :rows].reshape(B, npoints).astype(np.int64)

    # npoints > #voxels: sequential rejection-sampling top-up (host, as in original).
    # TODO(synk): inherently data-dependent/sequential; kept in host glue.
    for b in range(B):
        ns = num_selected[b]
        if ns < npoints:
            added = set(int(x) for x in cent[b, :ns])
            add_num = 0
            while add_num < npoints - ns:
                idx = rng.randrange(N)
                if idx not in added:
                    cent[b, ns + add_num] = idx
                    centroids_index[b].append(idx)
                    added.add(idx)
                    add_num += 1

    # PyTorch uses int64 (`long`); int32 used here (no native int64 vectors on TPU).
    centroids = jnp.asarray(cent, dtype=jnp.int32)
    return centroids, centroids_index


def _build_index_voxels(pos_np, grid=4):
    """Voxelize positions in [0,1)^3 into per-batch dict {(ix,iy,iz): [point idx]}."""
    B, N, _ = pos_np.shape
    index_voxels = []
    for b in range(B):
        d = {}
        cell = np.clip((pos_np[b] * grid).astype(np.int64), 0, grid - 1)
        for n in range(N):
            key = (int(cell[n, 0]), int(cell[n, 1]), int(cell[n, 2]))
            d.setdefault(key, []).append(n)
        index_voxels.append(d)
    return index_voxels


if __name__ == "__main__":
    key = jax.random.PRNGKey(0)
    B, N, npoints = 2, 64, 8

    pos = jax.random.uniform(key, (B, N, 3), dtype=jnp.float32)   # positions in [0,1)
    index_voxels = _build_index_voxels(np.asarray(pos), grid=4)

    centroids, centroids_index = rvs_forward(pos, index_voxels, npoints, seed=0)
    centroids = jax.block_until_ready(centroids)

    assert centroids.shape == (B, npoints)
    assert centroids.dtype == jnp.int32
    assert bool(jnp.all(centroids >= 0)) and bool(jnp.all(centroids < N))
    assert len(centroids_index) == B

    # Each sampled point must belong to the voxel it was drawn from.
    c_np = np.asarray(centroids)
    for b in range(B):
        for i, entry in enumerate(centroids_index[b]):
            if isinstance(entry, list):                 # voxel-sampled slot
                k = (entry[1], entry[2], entry[3])
                assert int(c_np[b, i]) in index_voxels[b][k]

    print("KERNEL_OK")
</pallas_src>

<mosaic_0001>
module attributes {stable_mosaic.version = 11 : i64} {
  func.func @_rvs_kernel(%arg0: i32, %arg1: memref<16x128xi16, #tpu.memory_space<vmem>>, %arg2: memref<1x128xi32, #tpu.memory_space<vmem>>, %arg3: memref<1x128xi32, #tpu.memory_space<vmem>>) attributes {dimension_semantics = [#tpu.dimension_semantics<parallel>], iteration_bounds = array<i64: 1>, scalar_prefetch = 0 : i64, scratch_operands = 0 : i64, tpu.core_type = #tpu.core_type<tc>, window_params = [{transform_indices = @transform_0, window_bounds = array<i64: 16, 128>}, {transform_indices = @transform_1, window_bounds = array<i64: 1, 128>}, {transform_indices = @transform_2, window_bounds = array<i64: 1, 128>}]} {
    %c0 = arith.constant 0 : index
    %c0_0 = arith.constant 0 : index
    %0 = vector.load %arg1[%c0, %c0_0] : memref<16x128xi16, #tpu.memory_space<vmem>>, vector<16x128xi16>
    %c0_1 = arith.constant 0 : index
    %c0_2 = arith.constant 0 : index
    %1 = vector.load %arg2[%c0_1, %c0_2] : memref<1x128xi32, #tpu.memory_space<vmem>>, vector<1x128xi32>
    %2 = tpu.iota {dimensions = array<i32: 0>} : vector<16x128xi32>
    %3 = vector.broadcast %1 : vector<1x128xi32> to vector<16x128xi32>
    %4 = arith.cmpi eq, %2, %3 : vector<16x128xi32>
    %c0_i16 = arith.constant 0 : i16
    %5 = vector.broadcast %c0_i16 : i16 to vector<16x128xi16>
    %6 = arith.select %4, %0, %5 : vector<16x128xi1>, vector<16x128xi16>
    %7 = arith.extsi %6 : vector<16x128xi16> to vector<16x128xi32>
    %cst = arith.constant dense<0> : vector<128xi32>
    %8 = vector.multi_reduction <add>, %7, %cst [0] : vector<16x128xi32> to vector<128xi32>
    %9 = vector.shape_cast %8 : vector<128xi32> to vector<1x128xi32>
    %c0_3 = arith.constant 0 : index
    %c0_4 = arith.constant 0 : index
    %10 = vector.load %arg3[%c0_3, %c0_4] : memref<1x128xi32, #tpu.memory_space<vmem>>, vector<1x128xi32>
    tpu.vector_store %arg3[%c0_3, %c0_4], %9 {strides = array<i32>} : memref<1x128xi32, #tpu.memory_space<vmem>>, vector<1x128xi32>,
    return
  }
  func.func @transform_0(%arg0: i32) -> (i32, i32) {
    %c0_i32 = arith.constant 0 : i32
    %c0_i32_0 = arith.constant 0 : i32
    return %c0_i32, %arg0 : i32, i32
  }
  func.func @transform_1(%arg0: i32) -> (i32, i32) {
    %c0_i32 = arith.constant 0 : i32
    %c0_i32_0 = arith.constant 0 : i32
    return %c0_i32, %arg0 : i32, i32
  }
  func.func @transform_2(%arg0: i32) -> (i32, i32) {
    %c0_i32 = arith.constant 0 : i32
    %c0_i32_0 = arith.constant 0 : i32
    return %c0_i32, %arg0 : i32, i32
  }
}

</mosaic_0001>

<bundles_post_ra>
// kernel: tpu_custom_call.1
= control target key start
LH: loop header
LB: loop body
LE: loop exit
PB: predicated region body
PF: predicated region fallthrough
CT: control target
= control target key end

     0   :  { %7 = vsyncpa [#allocation3], 0  ;;  %s167_s0 = inlined_call_operand.hbm [shape: s16[16,128], index: 0, kind: input, shape index: {}]   ;;  %s168_s1 = inlined_call_operand.vmem [shape: s32[1,128], index: 1, kind: input, shape index: {}]   ;;  %s169_s2 = inlined_call_operand.hbm [shape: s32[1,128], index: 2, kind: output, shape index: {}]  }
   0x1   :  { %8 = vsyncpa [#allocation4], 0  ;;  %s121_s9 = smov [#allocation2]   ;;  %s73_s13 = scalar_lea.hbm %s167_s0, 128 }
   0x2   :  { %s14_s10 = sshll.u32 %s121_s9, 4  ;;  %p74_p0 = scmp.ne.s32.totalorder %s167_s0, %s73_s13  ;;  %s15_s10 = int_to_ptr.vmem [resolvable:$true] %s14_s10 }
   0x3   :  { %p77_p1 = scmp.lt.u32.totalorder %s73_s13, %s167_s0 }
   0x5   :  { %p79_p2 = pnand %p77_p1, %p74_p0 }
   0x7   :  { %82 = shalt.err (!%p79_p2)
}
   0x8   :  { %s83_s18 = scalar_lea.vmem %s15_s10, 128  ;;  %p88_p4 = scmp.lt.s32.totalorder %s15_s10, %s15_s10 }
   0x9   :  { %p84_p3 = scmp.ne.s32.totalorder %s15_s10, %s83_s18  ;;  %p89_p5 = scmp.lt.s32.totalorder %s83_s18, %s83_s18 }
   0xb   :  { %p90_p6 = por %p89_p5, %p88_p4 }
   0xd   :  { %p91_p7 = pnand %p90_p6, %p84_p3 }
   0xf   :  { %94 = shalt.err (!%p91_p7)
}
  0x10   :  { %s122_s19 = smov 64   ;;  %s123_s20 = smov 4  }
  0x11   :  { %20 = dma.hbm_to_vmem [thread:$0]  %s167_s0, 128, %s15_s10, [#allocation3], %s122_s19, %s122_s19, %s123_s20  }
  0x12   :  { %117 = dma.done.wait [#allocation3], 128  }
  0x13   :  { %118 = vsyncadd [#allocation3], 4294967168  ;;  %v30_v0 = vlaneseq  ;;  %v27_v3 = vld [vmem:[#allocation2] sm:$0xf]  ;;  %v28_v5 = vld [vmem:[#allocation2 + $0x4] sm:$0xf] }
  0x14   :  { %v68_v4 = vld [vmem:[%s168_s1] ss:$0 sm:$0xff]  ;;  %s124_s0 = smov [#allocation5]  }
  0x15   :  { %v31_v1 = vshrl.u32 %v30_v0, 7  ;;  %s59_s25 = sshll.u32 %s124_s0, 4  ;;  %s60_s25 = int_to_ptr.vmem [resolvable:$true] %s59_s25 }
  0x16   :  { %s95_s1 = scalar_lea.vmem %s60_s25, 16  ;;  %s99_s26 = scalar_lea.vmem %s60_s25, 32 }
  0x17   :  { %v32_v2 = vadd.s32 8, %v31_v1  ;;  %vm37_vm0 = vcmp.eq.s32.totalorder %v31_v1, %v68_v4  ;;  %p96_p8 = scmp.ne.s32.totalorder %s60_s25, %s95_s1  ;;  %p100_p9 = scmp.lt.s32.totalorder %s60_s25, %s60_s25 }
  0x18   :  { %vm39_vm2 = vmpackc.low %vm37_vm0, %vm37_vm0  ;;  %p101_p10 = scmp.lt.s32.totalorder %s99_s26, %s95_s1 }
  0x19   :  { %vm38_vm1 = vcmp.eq.s32.totalorder %v32_v2, %v68_v4  ;;  %v41_v6 = vsel %vm39_vm2, %v27_v3, 0 }
  0x1a   :  { %vm40_vm3 = vmpackc.low %vm38_vm1, %vm38_vm1  ;;  %v43_v8 = vunpack.c.l.b16 %v41_v6  ;;  %p102_p11 = por %p101_p10, %p100_p9 }
  0x1b   :  { %v42_v7 = vsel %vm40_vm3, %v28_v5, 0 }
  0x1c   :  { %v44_v9 = vunpack.c.l.b16 %v42_v7  ;;  %p103_p12 = pnand %p102_p11, %p96_p8 }
  0x1e   :  { %v45_v10 = vadd.s32 %v44_v9, %v43_v8 }
  0x20   :  { %v46_v11 = vrot.slane %v45_v10, 4 }
  0x22   :  { %v47_v12 = vadd.s32 %v46_v11, %v45_v10 }
  0x24   :  { %v48_v13 = vrot.slane %v47_v12, 2 }
  0x26   :  { %v49_v14 = vadd.s32 %v48_v13, %v47_v12 }
  0x28   :  { %v50_v15 = vrot.slane %v49_v14, 1 }
  0x2a   :  { %v51_v16 = vadd.s32 %v50_v15, %v49_v14 }
  0x2c   :  { %52 = vst [vmem:[#allocation5] sm:$0x1] %v51_v16 }
  0x2d   :  { %106 = shalt.err (!%p103_p12)
}
  0x2e   :  { %s107_s29 = scalar_lea.hbm %s169_s2, 16 }
  0x2f   :  { %p108_p13 = scmp.ne.s32.totalorder %s169_s2, %s107_s29  ;;  %p111_p0 = scmp.lt.u32.totalorder %s107_s29, %s169_s2 }
  0x31   :  { %p113_p1 = pnand %p111_p0, %p108_p13 }
  0x33   :  { %116 = shalt.err (!%p113_p1)
}
  0x34   :  { %62 = dma.vmem_to_hbm [thread:$0]  %s60_s25, 16, %s169_s2, [#allocation4]  }
  0x35   :  { %119 = dma.done.wait [#allocation4], 16  }
  0x36   :  { %120 = vsyncadd [#allocation4], 4294967280 }
  0x37   :  { %66 = vsyncpa [#allocation3], 1 }
  0x38   :  { %67 = vsyncpa [#allocation4], 1 }

</bundles_post_ra>
